<compile_context>
chip_gen: v7x
topology: tpu7x:2x2x1
jax: 0.10.0
libtpu: 0.0.40
codegen_flags: <defaults>
</compile_context>

<pallas_src>
import jax
import jax.numpy as jnp
from jax import lax
from jax.experimental import pallas as pl
from jax.experimental.pallas import tpu as pltpu


def _round_up(x, m):
    return (x + m - 1) // m * m


def _pad2(x, rows, cols):
    return jnp.pad(x, ((0, rows - x.shape[0]), (0, cols - x.shape[1])))


def _device_kind():
    try:
        return jax.devices()[0].device_kind.lower()
    except Exception:  # pragma: no cover
        return ""


def _tpu_config(dp):
    """(stream budget bytes, vmem-limit cap bytes, n D-tiles, W_img buffer depth)."""
    kind = _device_kind()
    if "v7" in kind or "tpu7" in kind:
        # 64 MiB VMEM/TC, 2 TC/chip: split D across cores, modest VMEM request.
        return 12 << 20, 46 << 20, 2, 2
    if "v6" in kind or "tpu6" in kind:
        # 128 MiB VMEM: wide tiles + 3-deep W_img stream to hide per-step issue cost.
        return 32 << 20, 100 << 20, 1, 3
    # v5e / unknown: lowest HBM BW, strictly mem-bound; keep K tiles wide enough.
    budget = (16 << 20) if dp > 2048 else (8 << 20)
    return budget, 64 << 20, 1, 2


def _pick_tk(Fp, budget_bytes, Bp, tn, itemsize, requested):
    """K-tile width: multiple of 128 that divides Fp, sized to the stream budget
    but capped so the reduction keeps >=~4 pipelined steps (tk floor ~512)."""
    units_total = Fp // 128
    if requested is not None:
        cand = max(1, min(_round_up(requested, 128) // 128, units_total))
    else:
        per_k = 2 * (Bp + tn) * itemsize          # double-buffered bytes per K element
        budget_units = max(1, int(budget_bytes // per_k) // 128)
        cap_units = max(4, (Fp // 4) // 128)      # >=4 steps unless that pushes tk < 512
        cand = max(1, min(budget_units, cap_units, units_total))
    while units_total % cand:                     # never pad F beyond round_up(F, 128)
        cand -= 1
    return cand * 128


def _wimg_spec(tk, tn, n_buf):
    if n_buf != 2 and hasattr(pl, "Buffered"):
        try:
            return pl.BlockSpec((tk, tn), lambda j, k: (k, j),
                                pipeline_mode=pl.Buffered(n_buf))
        except TypeError:  # older jax without pipeline_mode kwarg
            pass
    return pl.BlockSpec((tk, tn), lambda j, k: (k, j))


def prepare_image_projection(w_img, *, dtype=jnp.bfloat16):
    """Pad + cast the dominant (F, D) projection weight ONCE; callers should cache
    the result so every forward avoids an extra full-HBM round trip of W_img."""
    F, D = w_img.shape
    D128 = _round_up(D, 128)
    _, _, nj, _ = _tpu_config(D128)
    nj = max(1, min(nj, D128 // 128))             # only split D if each tile >= 128 wide
    tn = _round_up(pl.cdiv(D128, nj), 128)
    Dp = nj * tn
    Fp = _round_up(F, 128)
    w_img_p = _pad2(w_img.astype(dtype), Fp, Dp)  # (Fp, Dp) bf16, padded with zeros
    return w_img_p, dict(F=F, D=D, Fp=Fp, Dp=Dp, tn=tn, nj=nj)


def _dirsim_kernel(img_flat_ref, w_img_ref, txt_feat_ref, dot_ref, sq_ref, acc_ref):
    """grid = (nj D-tiles [parallel], nk F-tiles [arbitrary reduction])."""
    k = pl.program_id(1)

    @pl.when(k == 0)
    def _init():
        acc_ref[...] = jnp.zeros_like(acc_ref)

    # Streamed image-encoder partial product for this (F-tile, D-tile), f32 acc.
    acc_ref[...] += jnp.dot(img_flat_ref[...], w_img_ref[...],
                            preferred_element_type=jnp.float32)

    @pl.when(k == pl.num_programs(1) - 1)
    def _finalize():
        img_emb = acc_ref[...]                 # (Bp, tn) f32 slice of img_emb
        txt = txt_feat_ref[...]                # (Bp, tn) f32, already L2-normalized
        dot_p = jnp.sum(img_emb * txt, axis=-1, keepdims=True)
        sq_p = jnp.sum(img_emb * img_emb, axis=-1, keepdims=True)
        # Lane-dense (Bp, 128) slabs: unmasked full-width stores.
        dot_ref[...] = jnp.broadcast_to(dot_p, dot_ref.shape)
        sq_ref[...] = jnp.broadcast_to(sq_p, sq_ref.shape)


def directional_similarity(image_nchw, caption_ids, embed_table, w_txt,
                           *, w_img=None, w_img_prepared=None, tk=None):
    """Glue (flatten / embedding gather / mean-pool / tiny text matmul / padding)
    in plain JAX; the dominant image-encoder matmul + norms + cosine in Pallas."""
    if w_img_prepared is None:
        if w_img is None:
            raise ValueError("pass w_img or a cached prepare_image_projection result")
        w_img_prepared = prepare_image_projection(w_img)
    w_img_p, meta = w_img_prepared
    F, Fp, Dp, tn, nj = meta["F"], meta["Fp"], meta["Dp"], meta["tn"], meta["nj"]

    B = image_nchw.shape[0]
    img_flat = image_nchw.reshape(B, -1)                     # (B, F)
    assert img_flat.shape[1] == F

    cdtype = jnp.bfloat16
    itemsize = jnp.dtype(cdtype).itemsize

    # bf16 sublane packing: 8 rows for tiny batches, multiples of 16 above that.
    Bp = 8 if B <= 8 else _round_up(B, 16)

    stream_budget, vmem_cap, _, n_wimg_buf = _tpu_config(Dp)
    tk = _pick_tk(Fp, stream_budget, Bp, tn, itemsize, tk)
    nk = Fp // tk
    if nk < n_wimg_buf:
        n_wimg_buf = 2

    # ---- tiny text branch (<<1% of HBM bytes) stays in plain JAX -------------
    tok_emb = jnp.take(embed_table, caption_ids, axis=0)     # (B, L, H)
    txt_pooled = jnp.mean(tok_emb, axis=1)                   # (B, H)
    txt_emb = jnp.dot(txt_pooled.astype(cdtype), w_txt.astype(cdtype),
                      preferred_element_type=jnp.float32)    # (B, D)
    txt_norm = jnp.sqrt(jnp.sum(txt_emb * txt_emb, axis=1, keepdims=True))
    txt_feat = txt_emb / jnp.maximum(txt_norm, 1e-12)        # unit rows (module's /norm)
    txt_feat_p = _pad2(txt_feat, Bp, Dp)                     # (Bp, Dp) f32

    img_flat_p = _pad2(img_flat.astype(cdtype), Bp, Fp)      # (Bp, Fp) bf16

    # Exact VMEM footprint (buffer counts already included) + ~30% headroom.
    stream_bytes = 2 * Bp * tk * itemsize + n_wimg_buf * tk * tn * itemsize
    txt_bytes = 2 * Bp * tn * 4
    scratch_bytes = Bp * tn * 4
    out_bytes = 2 * 2 * Bp * 128 * 4
    vmem_limit = int(min(max(1.3 * (stream_bytes + txt_bytes + scratch_bytes + out_bytes),
                             4 << 20), vmem_cap))

    cost = pl.CostEstimate(
        flops=2 * Bp * Fp * Dp + 4 * Bp * Dp,
        transcendentals=0,
        bytes_accessed=(nj * Bp * Fp + Fp * Dp) * itemsize + Bp * Dp * 4
                       + 2 * nj * Bp * 128 * 4,
    )

    dot_p, sq_p = pl.pallas_call(
        _dirsim_kernel,
        out_shape=(jax.ShapeDtypeStruct((nj, Bp, 128), jnp.float32),
                   jax.ShapeDtypeStruct((nj, Bp, 128), jnp.float32)),
        grid=(nj, nk),
        in_specs=[
            pl.BlockSpec((Bp, tk), lambda j, k: (0, k)),     # image activations (stream)
            _wimg_spec(tk, tn, n_wimg_buf),                  # image projection (stream)
            pl.BlockSpec((Bp, tn), lambda j, k: (0, j)),     # normalized text features
        ],
        out_specs=[
            pl.BlockSpec((None, Bp, 128), lambda j, k: (j, 0, 0)),
            pl.BlockSpec((None, Bp, 128), lambda j, k: (j, 0, 0)),
        ],
        scratch_shapes=[pltpu.VMEM((Bp, tn), jnp.float32)],  # img_emb accumulator
        compiler_params=pltpu.CompilerParams(
            dimension_semantics=("parallel", "arbitrary"),   # D-tiles || , F reduction
            vmem_limit_bytes=vmem_limit,
        ),
        cost_estimate=cost,
    )(img_flat_p, w_img_p, txt_feat_p)

    # Trivial cross-D-tile combine + rsqrt (B-length) in the wrapper.
    dot_ab = jnp.sum(dot_p[:, :B, 0], axis=0)                # (B,)
    img_sq = jnp.sum(sq_p[:, :B, 0], axis=0)                 # (B,)
    return dot_ab * lax.rsqrt(jnp.maximum(img_sq, 1e-16))    # (B,)


if __name__ == "__main__":
    key = jax.random.PRNGKey(0)
    k_img, k_cap, k_emb, k_wimg, k_wtxt = jax.random.split(key, 5)

    B, C, Hh, Ww = 2, 4, 16, 16          # image (NCHW)
    L, HID, VOCAB, D = 8, 32, 64, 32     # caption length, text hidden, vocab, embed dim

    image = jax.random.normal(k_img, (B, C, Hh, Ww), dtype=jnp.float32)
    caption_ids = jax.random.randint(k_cap, (B, L), 0, VOCAB, dtype=jnp.int32)

    # Deterministic synthetic "encoder" parameters.
    embed_table = jax.random.normal(k_emb, (VOCAB, HID), dtype=jnp.float32) * 0.1
    w_img = jax.random.normal(k_wimg, (C * Hh * Ww, D), dtype=jnp.float32) * 0.02
    w_txt = jax.random.normal(k_wtxt, (HID, D), dtype=jnp.float32) * 0.1

    # Pad/cast the big projection once (the cached, per-call-free path).
    w_img_prepared = prepare_image_projection(w_img)

    # tk=256 forces a multi-step F reduction (F=1024 -> 4 grid steps) so the
    # accumulate / init / finalize path is exercised even at toy shapes.
    out = directional_similarity(image, caption_ids, embed_table, w_txt,
                                 w_img_prepared=w_img_prepared, tk=256)
    jax.block_until_ready(out)

    # Pure-JAX reference (same bf16-input / f32-accum encoder math, then the
    # original module's normalize + cosine_similarity formulation).
    img_flat = image.reshape(B, -1)
    txt_pooled = jnp.mean(jnp.take(embed_table, caption_ids, axis=0), axis=1)
    img_emb = jnp.dot(img_flat.astype(jnp.bfloat16), w_img.astype(jnp.bfloat16),
                      preferred_element_type=jnp.float32)
    txt_emb = jnp.dot(txt_pooled.astype(jnp.bfloat16), w_txt.astype(jnp.bfloat16),
                      preferred_element_type=jnp.float32)
    img_f = img_emb / jnp.linalg.norm(img_emb, axis=1, keepdims=True)
    txt_f = txt_emb / jnp.linalg.norm(txt_emb, axis=1, keepdims=True)
    ref = jnp.sum(img_f * txt_f, axis=1) / jnp.maximum(
        jnp.linalg.norm(img_f, axis=1) * jnp.linalg.norm(txt_f, axis=1), 1e-8)

    assert out.shape == (B,), out.shape
    assert jnp.allclose(out, ref, atol=2e-3), (out, ref)

    print("KERNEL_OK")
</pallas_src>

<mosaic_0001>
module attributes {stable_mosaic.version = 11 : i64} {
  func.func @_dirsim_kernel(%arg0: i32, %arg1: i32, %arg2: memref<8x256xbf16, #tpu.memory_space<vmem>>, %arg3: memref<256x128xbf16, #tpu.memory_space<vmem>>, %arg4: memref<8x128xf32, #tpu.memory_space<vmem>>, %arg5: memref<1x8x128xf32, #tpu.memory_space<vmem>>, %arg6: memref<1x8x128xf32, #tpu.memory_space<vmem>>, %arg7: memref<8x128xf32, #tpu.memory_space<vmem>>) attributes {dimension_semantics = [#tpu.dimension_semantics<parallel>, #tpu.dimension_semantics<arbitrary>], iteration_bounds = array<i64: 1, 4>, scalar_prefetch = 0 : i64, scratch_operands = 1 : i64, tpu.core_type = #tpu.core_type<tc>, window_params = [{transform_indices = @transform_0, window_bounds = array<i64: 8, 256>}, {transform_indices = @transform_1, window_bounds = array<i64: 256, 128>}, {transform_indices = @transform_2, window_bounds = array<i64: 8, 128>}, {transform_indices = @transform_3, window_bounds = array<i64: 1, 8, 128>}, {transform_indices = @transform_4, window_bounds = array<i64: 1, 8, 128>}]} {
    %c0_i32 = arith.constant 0 : i32
    %0 = arith.cmpi eq, %arg1, %c0_i32 : i32
    %1 = arith.extui %0 : i1 to i32
    %c0_i32_0 = arith.constant 0 : i32
    %2 = arith.cmpi ne, %1, %c0_i32_0 : i32
    scf.if %2 {
      %cst_9 = arith.constant 0.000000e+00 : f32
      %12 = vector.broadcast %cst_9 : f32 to vector<8x128xf32>
      %c0_10 = arith.constant 0 : index
      %c0_11 = arith.constant 0 : index
      %13 = vector.load %arg7[%c0_10, %c0_11] : memref<8x128xf32, #tpu.memory_space<vmem>>, vector<8x128xf32>
      tpu.vector_store %arg7[%c0_10, %c0_11], %12 {strides = array<i32>} : memref<8x128xf32, #tpu.memory_space<vmem>>, vector<8x128xf32>,
    } else {
    }
    %c0 = arith.constant 0 : index
    %c0_1 = arith.constant 0 : index
    %3 = vector.load %arg7[%c0, %c0_1] : memref<8x128xf32, #tpu.memory_space<vmem>>, vector<8x128xf32>
    %c0_2 = arith.constant 0 : index
    %c0_3 = arith.constant 0 : index
    %4 = vector.load %arg2[%c0_2, %c0_3] : memref<8x256xbf16, #tpu.memory_space<vmem>>, vector<8x256xbf16>
    %c0_4 = arith.constant 0 : index
    %c0_5 = arith.constant 0 : index
    %5 = vector.load %arg3[%c0_4, %c0_5] : memref<256x128xbf16, #tpu.memory_space<vmem>>, vector<256x128xbf16>
    %cst = arith.constant dense<0.000000e+00> : vector<8x128xf32>
    %6 = tpu.matmul %4, %5, %cst {dimension_numbers = #tpu.dot_dimension_numbers<[1], [0], [0], [1], [0, 0, 1, 1], [], []>} : vector<8x256xbf16>, vector<256x128xbf16>, vector<8x128xf32> -> vector<8x128xf32>
    %7 = arith.addf %3, %6 : vector<8x128xf32>
    %c0_6 = arith.constant 0 : index
    %c0_7 = arith.constant 0 : index
    %8 = vector.load %arg7[%c0_6, %c0_7] : memref<8x128xf32, #tpu.memory_space<vmem>>, vector<8x128xf32>
    tpu.vector_store %arg7[%c0_6, %c0_7], %7 {strides = array<i32>} : memref<8x128xf32, #tpu.memory_space<vmem>>, vector<8x128xf32>,
    %c3_i32 = arith.constant 3 : i32
    %9 = arith.cmpi eq, %arg1, %c3_i32 : i32
    %10 = arith.extui %9 : i1 to i32
    %c0_i32_8 = arith.constant 0 : i32
    %11 = arith.cmpi ne, %10, %c0_i32_8 : i32
    scf.if %11 {
      %c0_9 = arith.constant 0 : index
      %c0_10 = arith.constant 0 : index
      %12 = vector.load %arg7[%c0_9, %c0_10] : memref<8x128xf32, #tpu.memory_space<vmem>>, vector<8x128xf32>
      %c0_11 = arith.constant 0 : index
      %c0_12 = arith.constant 0 : index
      %13 = vector.load %arg4[%c0_11, %c0_12] : memref<8x128xf32, #tpu.memory_space<vmem>>, vector<8x128xf32>
      %14 = arith.mulf %12, %13 : vector<8x128xf32>
      %cst_13 = arith.constant dense<0.000000e+00> : vector<8xf32>
      %15 = vector.multi_reduction <add>, %14, %cst_13 [1] : vector<8x128xf32> to vector<8xf32>
      %16 = vector.shape_cast %15 : vector<8xf32> to vector<8x1xf32>
      %17 = arith.mulf %12, %12 : vector<8x128xf32>
      %cst_14 = arith.constant dense<0.000000e+00> : vector<8xf32>
      %18 = vector.multi_reduction <add>, %17, %cst_14 [1] : vector<8x128xf32> to vector<8xf32>
      %19 = vector.shape_cast %18 : vector<8xf32> to vector<8x1xf32>
      %20 = vector.shape_cast %16 : vector<8x1xf32> to vector<8x1xf32>
      %21 = vector.broadcast %20 : vector<8x1xf32> to vector<8x128xf32>
      %c0_15 = arith.constant 0 : index
      %c0_16 = arith.constant 0 : index
      %c0_17 = arith.constant 0 : index
      %22 = vector.load %arg5[%c0_15, %c0_16, %c0_17] : memref<1x8x128xf32, #tpu.memory_space<vmem>>, vector<1x8x128xf32>
      %23 = vector.shape_cast %22 : vector<1x8x128xf32> to vector<8x128xf32>
      %24 = vector.shape_cast %21 : vector<8x128xf32> to vector<1x8x128xf32>
      tpu.vector_store %arg5[%c0_15, %c0_16, %c0_17], %24 {strides = array<i32>} : memref<1x8x128xf32, #tpu.memory_space<vmem>>, vector<1x8x128xf32>,
      %25 = vector.shape_cast %19 : vector<8x1xf32> to vector<8x1xf32>
      %26 = vector.broadcast %25 : vector<8x1xf32> to vector<8x128xf32>
      %c0_18 = arith.constant 0 : index
      %c0_19 = arith.constant 0 : index
      %c0_20 = arith.constant 0 : index
      %27 = vector.load %arg6[%c0_18, %c0_19, %c0_20] : memref<1x8x128xf32, #tpu.memory_space<vmem>>, vector<1x8x128xf32>
      %28 = vector.shape_cast %27 : vector<1x8x128xf32> to vector<8x128xf32>
      %29 = vector.shape_cast %26 : vector<8x128xf32> to vector<1x8x128xf32>
      tpu.vector_store %arg6[%c0_18, %c0_19, %c0_20], %29 {strides = array<i32>} : memref<1x8x128xf32, #tpu.memory_space<vmem>>, vector<1x8x128xf32>,
    } else {
    }
    return
  }
  func.func @transform_0(%arg0: i32, %arg1: i32) -> (i32, i32) {
    %c0_i32 = arith.constant 0 : i32
    %c0_i32_0 = arith.constant 0 : i32
    return %c0_i32, %arg1 : i32, i32
  }
  func.func @transform_1(%arg0: i32, %arg1: i32) -> (i32, i32) {
    %c0_i32 = arith.constant 0 : i32
    return %arg1, %arg0 : i32, i32
  }
  func.func @transform_2(%arg0: i32, %arg1: i32) -> (i32, i32) {
    %c0_i32 = arith.constant 0 : i32
    %c0_i32_0 = arith.constant 0 : i32
    return %c0_i32, %arg0 : i32, i32
  }
  func.func @transform_3(%arg0: i32, %arg1: i32) -> (i32, i32, i32) {
    %c0_i32 = arith.constant 0 : i32
    %c0_i32_0 = arith.constant 0 : i32
    %c0_i32_1 = arith.constant 0 : i32
    return %arg0, %c0_i32, %c0_i32_0 : i32, i32, i32
  }
  func.func @transform_4(%arg0: i32, %arg1: i32) -> (i32, i32, i32) {
    %c0_i32 = arith.constant 0 : i32
    %c0_i32_0 = arith.constant 0 : i32
    %c0_i32_1 = arith.constant 0 : i32
    return %arg0, %c0_i32, %c0_i32_0 : i32, i32, i32
  }
}

</mosaic_0001>

<bundles_post_ra>
// kernel: tpu_custom_call.1
= control target key start
LH: loop header
LB: loop body
LE: loop exit
PB: predicated region body
PF: predicated region fallthrough
CT: control target
= control target key end

     0   :  { %10 = vsyncpa [#allocation4], 0  ;;  %s1319_s0 = inlined_call_operand.hbm [shape: bf16[8,1024], index: 0, kind: input, shape index: {}]   ;;  %s1320_s1 = inlined_call_operand.hbm [shape: bf16[1024,128], index: 1, kind: input, shape index: {}]   ;;  %s1321_s2 = inlined_call_operand.hbm [shape: f32[8,128], index: 2, kind: input, shape index: {}]   ;;  %s1322_s3 = inlined_call_operand.hbm [shape: f32[1,8,128], index: 3, kind: output, shape index: {0}]   ;;  %s1323_s4 = inlined_call_operand.hbm [shape: f32[1,8,128], index: 4, kind: output, shape index: {1}]  }
   0x1   :  { %12 = vsyncpa [#allocation4 + $0x1], 0 }
   0x2   :  { %13 = vsyncpa [#allocation7], 0 }
   0x3   :  { %15 = vsyncpa [#allocation7 + $0x1], 0 }
   0x4   :  { %16 = vsyncpa [#allocation5], 0 }
   0x5   :  { %17 = vsyncpa [#allocation11], 0  ;;  %s1029_s15 = smov 0   ;;  %s1031_s16 = smov 0  }
   0x6   :  { %s1033_s17 = smov 0   ;;  %s1035_s18 = smov 0  }
   0x7   :  { %s1037_s19 = smov 0   ;;  %s1039_s20 = smov 0  }
   0x8 LB: > { %s1058_s21 = sadd.s32 4294967295, %s994_s20   ;;  %s42_s22 = sadd.s32 1, %s982_s17  ;;  %s994_s20 = sphi %s1039_s20, %s23_s20   ;;  %s990_s19 = sphi %s1037_s19, %s1344_s19   ;;  %s986_s18 = sphi %s1035_s18, %s1343_s18   ;;  %s982_s17 = sphi %s1033_s17, %s1342_s17   ;;  %s978_s16 = sphi %s1031_s16, %s1341_s16   ;;  %s974_s15 = sphi %s1029_s15, %s1340_s15  }
   0x9   : > { %p49_p0 = scmp.ne.s32.totalorder %s982_s17, %s978_s16  ;;  %p55_p1 = scmp.ne.s32.totalorder %s978_s16, %s974_s15 }
   0xa   : > { %p1324_p2 = scmp.eq.s32.totalorder %s1058_s21, 0  ;;  %p619_p3 = scmp.ge.s32.totalorder %s994_s20, 1 }
   0xb   : > { %p172_p4 = scmp.lt.s32.totalorder %s994_s20, 5  ;;  %s996_s25 = smov [#allocation8]  }
   0xc   : > { %p1069_p5 = por %p1324_p2, %p55_p1  ;;  %s187_s26 = sshll.u32 %s996_s25, 4  ;;  %s188_s26 = int_to_ptr.vmem [resolvable:$true] %s187_s26 }
   0xd   : > { %p1073_p6 = pnand %p619_p3, %p172_p4  ;;  %p50_p8 = scmp.eq.s32.totalorder %s994_s20, 0 }
   0xe   : > { %s1327_s23 = scalar_select %p1069_p5, 1, 0 }
   0xf   : > { %s1328_s24 = scalar_select %p1073_p6, 1, 0 }
  0x10   : > { %p698_p7 = pneg %p1073_p6  ;;  %s32_s28 = sadd.s32 1, %s990_s19 }
  0x11   : > { %p1087_p10 = scmp.ge.s32.totalorder %s32_s28, 4  ;;  %p1094_p11 = por %p50_p8, %p49_p0 }
  0x12   : > { %p1082_p9 = pnand %p698_p7, %p1324_p2  ;;  %s788_s7 = scalar_lea.hbm %s1321_s2, 128 }
  0x13   : > { %s1330_s29 = scalar_select %p1087_p10, 1, 0 }
  0x14   : > { %s1331_s30 = scalar_select %p1094_p11, 1, 0 }
  0x15   : > { %p789_p13 = scmp.ne.s32.totalorder %s1321_s2, %s788_s7  ;;  %p790_p1 = pneg %p1082_p9 }
  0x16   : > { %p795_p0 = scmp.lt.u32.totalorder %s788_s7, %s1321_s2 }
  0x17   : > { %p791_p3 = pnand %p790_p1, %p789_p13 }
  0x19   : > { %p792_p4 = pneg %p791_p3 }
  0x1b   : > { %p797_p7 = pnand %p795_p0, %p792_p4 }
  0x1d   : > { %800 = shalt.err (!%p797_p7)
}
  0x1e   : > { %s801_s12 = scalar_lea.vmem %s188_s26, 128  ;;  %p809_p5 = scmp.lt.s32.totalorder %s188_s26, %s188_s26 }
  0x1f   : > { %p802_p8 = scmp.ne.s32.totalorder %s188_s26, %s801_s12  ;;  %p810_p6 = scmp.lt.s32.totalorder %s801_s12, %s801_s12 }
  0x21   : > { %p804_p2 = pnand %p802_p8, %p790_p1  ;;  %p811_p11 = por %p810_p6, %p809_p5 }
  0x23   : > { %p805_p12 = pneg %p804_p2 }
  0x25   : > { %p812_p10 = pnand %p811_p11, %p805_p12 }
  0x27   : > { %815 = shalt.err (!%p812_p10)
}
  0x28   : > { %701 = dma.hbm_to_vmem [thread:$0]  (!%p1082_p9), %s1321_s2, 128, %s188_s26, [#allocation7]  }
  0x29   : > { %p1332_p2 = scmp.ne.s32.totalorder %s1330_s29, 0  ;;  %s1120_s15 = sand.u32 1, %s982_s17  }
  0x2a   : > { %s658_s25 = sshll.u32 %s990_s19, 7  ;;  %s622_s5 = sshll.u32 %s1120_s15, 3 }
  0x2b   : > { %s1346_s28 = smov (%p1332_p2, %s32_s28), 0  ;;  %s1129_s8 = scalar_lea.hbm %s1319_s0, %s658_s25 }
  0x2c   : > { %s39_s27 = ssub.s32 %s990_s19, %s1346_s28  ;;  %s202_s29 = scalar_lea.vmem [#allocation3], %s622_s5 }
  0x2d   : > { %p40_p5 = scmp.eq.s32.totalorder %s39_s27, 0  ;;  %s210_s9 = sshll.u32 %s202_s29, 4  ;;  %s1144_s9 = int_to_ptr.vmem [resolvable:$true] %s210_s9 }
  0x2e   : > { %p1333_p6 = scmp.ne.s32.totalorder %s1331_s30, 0  ;;  %p1334_p9 = scmp.lt.s32.totalorder %s994_s20, 4 }
  0x2f   : > { %s1134_s26 = scalar_select %p40_p5, %s982_s17, %s42_s22  }
  0x30   : > { %p1140_p10 = pnand %p1334_p9, %p1333_p6  ;;  %s625_s11 = sshll.u32 %s1120_s15, 7 }
  0x31   : > { %s199_s12 = scalar_lea.sflag [#allocation4], %s1120_s15  ;;  %s816_s13 = scalar_lea.hbm %s1129_s8, 128 }
  0x32   : > { %p817_p11 = scmp.ne.s32.totalorder %s1129_s8, %s816_s13  ;;  %p818_p12 = pneg %p1140_p10 }
  0x33   : > { %s821_s14 = scalar_lea.hbm %s1319_s0, 512  ;;  %p822_p3 = scmp.lt.u32.totalorder %s1129_s8, %s1319_s0 }
  0x34   : > { %p819_p13 = pnand %p818_p12, %p817_p11  ;;  %p823_p4 = scmp.lt.u32.totalorder %s821_s14, %s816_s13 }
  0x35   : > { %p825_p7 = scmp.lt.u32.totalorder %s816_s13, %s1129_s8 }
  0x36   : > { %p820_p1 = pneg %p819_p13  ;;  %p824_p0 = por %p823_p4, %p822_p3 }
  0x38   : > { %p826_p8 = por %p825_p7, %p824_p0 }
  0x3a   : > { %p827_p2 = pnand %p826_p8, %p820_p1 }
  0x3c   : > { %830 = shalt.err (!%p827_p2)
}
  0x3d   : > { %s831_s5 = scalar_lea.vmem %s1144_s9, 128  ;;  %s997_s6 = smov [#allocation3]  }
  0x3e   : > { %p832_p5 = scmp.ne.s32.totalorder %s1144_s9, %s831_s5  ;;  %s836_s7 = sshll.u32 %s997_s6, 4  ;;  %s837_s7 = int_to_ptr.vmem [resolvable:$false] %s836_s7 }
  0x3f   : > { %s838_s29 = scalar_lea.vmem %s837_s7, 256  ;;  %p839_p11 = scmp.lt.s32.totalorder %s1144_s9, %s837_s7 }
  0x40   : > { %p834_p6 = pnand %p832_p5, %p818_p12  ;;  %p840_p13 = scmp.lt.s32.totalorder %s838_s29, %s831_s5 }
  0x42   : > { %p835_p9 = pneg %p834_p6  ;;  %p841_p3 = por %p840_p13, %p839_p11 }
  0x44   : > { %p842_p4 = pnand %p841_p3, %p835_p9 }
  0x46   : > { %845 = shalt.err (!%p842_p4)
}
  0x47   : > { %705 = dma.hbm_to_vmem [thread:$0]  (!%p1140_p10), %s1129_s8, 128, %s1144_s9, %s199_s12  }
  0x48   : > { %s659_s13 = sshll.u32 %s990_s19, 11  ;;  %s221_s22 = scalar_lea.vmem [#allocation6], %s625_s11 }
  0x49   : > { %s229_s30 = sshll.u32 %s221_s22, 4  ;;  %s217_s14 = sand.u32 1, %s994_s20   ;;  %s1176_s30 = int_to_ptr.vmem [resolvable:$true] %s229_s30 }
  0x4a   : > { %s1182_s5 = scalar_lea.hbm %s1320_s1, %s659_s13  ;;  %s1184_s6 = scalar_lea.sflag [#allocation7], %s217_s14 }
  0x4b   : > { %s846_s7 = scalar_lea.hbm %s1182_s5, 2048  ;;  %s851_s9 = scalar_lea.hbm %s1320_s1, 8192 }
  0x4c   : > { %p847_p1 = scmp.ne.s32.totalorder %s1182_s5, %s846_s7  ;;  %p852_p8 = scmp.lt.u32.totalorder %s1182_s5, %s1320_s1 }
  0x4d   : > { %p853_p2 = scmp.lt.u32.totalorder %s851_s9, %s846_s7  ;;  %p855_p6 = scmp.lt.u32.totalorder %s846_s7, %s1182_s5 }
  0x4e   : > { %p849_p0 = pnand %p847_p1, %p818_p12 }
  0x4f   : > { %p854_p5 = por %p853_p2, %p852_p8 }
  0x50   : > { %p850_p7 = pneg %p849_p0 }
  0x51   : > { %p856_p9 = por %p855_p6, %p854_p5 }
  0x53   : > { %p857_p11 = pnand %p856_p9, %p850_p7 }
  0x55   : > { %860 = shalt.err (!%p857_p11)
}
  0x56   : > { %s861_s29 = scalar_lea.vmem %s1176_s30, 2048  ;;  %s998_s13 = smov [#allocation6]  }
  0x57   : > { %p862_p13 = scmp.ne.s32.totalorder %s1176_s30, %s861_s29  ;;  %s866_s22 = sshll.u32 %s998_s13, 4  ;;  %s867_s22 = int_to_ptr.vmem [resolvable:$false] %s866_s22 }
  0x58   : > { %s868_s14 = scalar_lea.vmem %s867_s22, 4096  ;;  %p869_p1 = scmp.lt.s32.totalorder %s1176_s30, %s867_s22 }
  0x59   : > { %p864_p3 = pnand %p862_p13, %p818_p12  ;;  %p870_p0 = scmp.lt.s32.totalorder %s868_s14, %s861_s29 }
  0x5b   : > { %p865_p4 = pneg %p864_p3  ;;  %p871_p8 = por %p870_p0, %p869_p1 }
  0x5d   : > { %p872_p2 = pnand %p871_p8, %p865_p4 }
  0x5f   : > { %875 = shalt.err (!%p872_p2)
}
  0x60   : > { %s999_s25 = smov 64   ;;  %s1000_s27 = smov 4  }
  0x61   : > { %708 = dma.hbm_to_vmem [thread:$0]  (!%p1140_p10), %s1182_s5, 2048, %s1176_s30, %s1184_s6, %s999_s25, %s999_s25, %s1000_s27  }
  0x62   : > { %p1336_p12 = scmp.ne.s32.totalorder %s1328_s24, 0 }
  0x63   : > { %s243_s7 = sand.u32 (!%p1336_p12), 1, %s978_s16   ;;  %p1337_p7 = scmp.ne.s32.totalorder (!%p1336_p12), %s1327_s23, 0 }
  0x64   : > { %241 = sbr.rel (%p1336_p12) target bundleno = 578 (0x242), region = 32  ;;  %s629_s15 = sshll.u32 (!%p1336_p12), %s243_s7, 3 }
  0x65   : > { %s244_s8 = scalar_lea.sflag (!%p1336_p12), [#allocation4], %s243_s7  ;;  %s1213_s9 = scalar_lea.vmem (!%p1336_p12), [#allocation3], %s629_s15 }
  0x6b   : > { %953 = dma.done.wait (%p1337_p7), %s244_s8, 128  }
  0x6c   : > { %955 = vsyncadd (%p1337_p7), %s244_s8, 4294967168  ;;  %s252_s11 = sand.u32 1, %s1058_s21   ;;  %s630_s10 = sshll.u32 %s243_s7, 7 }
  0x6d   : > { %s253_s30 = scalar_lea.sflag [#allocation7], %s252_s11  ;;  %s1220_s5 = scalar_lea.vmem [#allocation6], %s630_s10 }
  0x6e   : > { %957 = dma.done.wait (%p1337_p7), %s253_s30, 2048  }
  0x6f   : > { %959 = vsyncadd (%p1337_p7), %s253_s30, 4294965248  ;;  %p1338_p10 = scmp.eq.s32.totalorder %s1058_s21, 0 }
  0x71   : > { %961 = dma.done.wait (%p1338_p10), [#allocation7], 128   ;;  %p1339_p5 = pmov %p1338_p10 }
  0x72   : > { %p632_p6 = scmp.ne.s32.totalorder %s986_s18, 0 }
  0x73   : > { %963 = vsyncadd (%p1339_p5), [#allocation7], 4294967168  ;;  %v1001_v0 = vmov (!%p632_p6), 0.0  }
  0x74   : > { %291 = sbr.rel (%p632_p6) target bundleno = 123 (0x7b), region = 48  ;;  %292 = vst [vmem:[#allocation2] sm:$0xff] (!%p632_p6), %v1001_v0 }
  0x7b PF: > { %v770_v1 = vld [vmem:[%s1220_s5 + $0x40] sm:$0xff]   ;;  %v772_v3 = vld [vmem:[%s1220_s5 + $0x48] sm:$0xff]   ;;  %v774_v5 = vld [vmem:[%s1220_s5 + $0x50] sm:$0xff]   ;;  %p651_p9 = scmp.ne.s32.totalorder %s986_s18, 3 }
  0x7c   : > { %v771_v2 = vld [vmem:[%s1220_s5] sm:$0xff]   ;;  %660 = vmatprep.subr.bf16.mxu0 %v770_v1  ;;  %v773_v4 = vld [vmem:[%s1220_s5 + $0x8] sm:$0xff]   ;;  %v775_v6 = vld [vmem:[%s1220_s5 + $0x10] sm:$0xff]  }
  0x7d   : > { %661 = vmatpush3.bf16.msra.mxu0 %v771_v2  ;;  %v776_v7 = vld [vmem:[%s1220_s5 + $0x58] sm:$0xff]   ;;  %v778_v9 = vld [vmem:[%s1220_s5 + $0x60] sm:$0xff]   ;;  %v780_v11 = vld [vmem:[%s1220_s5 + $0x68] sm:$0xff]  }
  0x7e   : > { %662 = vmatprep.subr.bf16.mxu0 %v772_v3  ;;  %v777_v8 = vld [vmem:[%s1220_s5 + $0x18] sm:$0xff]   ;;  %v779_v10 = vld [vmem:[%s1220_s5 + $0x20] sm:$0xff]   ;;  %v781_v14 = vld [vmem:[%s1220_s5 + $0x28] sm:$0xff]  }
  0x7f   : > { %v294_v12 = vld [vmem:[%s1213_s9] sm:$0xff]  ;;  %v293_v21 = vld [vmem:[#allocation2] sm:$0xff]  ;;  %v477_v28 = vld [vmem:[#allocation8] sm:$0xff] (!%p651_p9) }
  0x80   : > { %v634_v13 = vcombine.high %v294_v12, %v294_v12  ;;  %v782_v15 = vld [vmem:[%s1220_s5 + $0x70] sm:$0xff]   ;;  %v784_v17 = vld [vmem:[%s1220_s5 + $0x78] sm:$0xff]   ;;  %v633_v19 = vcombine.low %v294_v12, %v294_v12 }
  0x81   : > { %663 = vmatpush3.bf16.msra.mxu0 %v773_v4  ;;  %v783_v16 = vld [vmem:[%s1220_s5 + $0x30] sm:$0xff]   ;;  %v785_v18 = vld [vmem:[%s1220_s5 + $0x38] sm:$0xff]  }
  0x82   : > { %664 = vmatprep.subr.bf16.mxu0 %v774_v5  ;;  %462 = vmatprep.mubr.bf16.mxu0 %v634_v13 }
  0x85   : > { %665 = vmatpush3.bf16.msra.mxu0 %v775_v6 }
  0x86   : > { %666 = vmatprep.subr.bf16.mxu0 %v776_v7 }
  0x89   : > { %667 = vmatpush3.bf16.msra.mxu0 %v777_v8 }
  0x8a   : > { %668 = vmatprep.subr.bf16.mxu0 %v778_v9 }
  0x8d   : > { %669 = vmatpush3.bf16.msra.mxu0 %v779_v10 }
  0x8e   : > { %670 = vmatprep.subr.bf16.mxu0 %v780_v11 }
  0x91   : > { %671 = vmatpush3.bf16.msra.mxu0 %v781_v14 }
  0x92   : > { %672 = vmatprep.subr.bf16.mxu0 %v782_v15 }
  0x95   : > { %673 = vmatpush3.bf16.msra.mxu0 %v783_v16 }
  0x96   : > { %674 = vmatprep.subr.bf16.mxu0 %v784_v17 }
  0x99   : > { %675 = vmatpush3.bf16.msra.mxu0 %v785_v18 }
  0x9c   : > { %463 = vmatmul.mubr.bf16.vlgmr.msra.gmra.mrb[0].mxu0 %v633_v19 }
 0x16f   : > { %v676_v20 = vpop.f32.mrb[0].mxu0  ;;  %475 = sbr.rel (%p651_p9) target bundleno = 530 (0x212), region = 52 }
 0x170   : > { %v677_v22 = vpop.f32.mrb[1].mxu0 }
 0x171   : > { %v678_v23 = vadd.f32 %v677_v22, %v676_v20  ;;  %v679_v24 = vpop.f32.mrb[2].mxu0 }
 0x172   : > { %v680_v25 = vpop.f32.mrb[3].mxu0 }
 0x173   : > { %v470_v26 = vadd.f32 %v678_v23, %v293_v21 }
 0x175   : > { %471 = vst [vmem:[#allocation2] sm:$0xff] %v470_v26 }
 0x17c   : > { %v476_v27 = vld [vmem:[#allocation2] sm:$0xff] }
 0x17d   : > { %v478_v29 = vmul.f32 %v477_v28, %v476_v27  ;;  %v481_v30 = vmul.f32 %v476_v27, %v476_v27 }
 0x17f   : > { %479 = vadd.xlane.f32.xlu0 %v478_v29 }
 0x183   : > { %482 = vadd.xlane.f32.xlu0 %v481_v30 }
 0x20c   : > { %v480_v31 = vpop.xlane.xlu0 %479 }
 0x20d   : > { %484 = vst [vmem:[#allocation9] sm:$0xff] %v480_v31 }
 0x210   : > { %v483_v32 = vpop.xlane.xlu0 %482 }
 0x211   : > { %485 = vst [vmem:[#allocation10] sm:$0xff] %v483_v32 }
 0x212 PF: > { %p712_p11 = scmp.eq.s32.totalorder %s1058_s21, 3  ;;  %s1002_s23 = smov [#allocation9]  }
 0x213   : > { %s495_s24 = sshll.u32 %s1002_s23, 4  ;;  %s1003_s6 = smov [#allocation10]   ;;  %s496_s24 = int_to_ptr.vmem [resolvable:$true] %s495_s24 }
 0x214   : > { %s508_s12 = sshll.u32 %s1003_s6, 4  ;;  %s876_s18 = scalar_lea.vmem %s496_s24, 128  ;;  %s1250_s12 = int_to_ptr.vmem [resolvable:$true] %s508_s12 }
 0x215   : > { %p877_p13 = scmp.ne.s32.totalorder %s496_s24, %s876_s18  ;;  %p883_p1 = scmp.lt.s32.totalorder %s496_s24, %s496_s24 }
 0x216   : > { %p884_p0 = scmp.lt.s32.totalorder %s876_s18, %s876_s18 }
 0x217   : > { %p878_p3 = pnand %p877_p13, %p712_p11 }
 0x218   : > { %p885_p8 = por %p884_p0, %p883_p1 }
 0x219   : > { %p879_p4 = pneg %p878_p3 }
 0x21b   : > { %p886_p2 = pnand %p885_p8, %p879_p4 }
 0x21d   : > { %889 = shalt.err (!%p886_p2)
}
 0x21e   : > { %s890_s22 = scalar_lea.hbm %s1322_s3, 128 }
 0x21f   : > { %p891_p12 = scmp.ne.s32.totalorder %s1322_s3, %s890_s22  ;;  %p896_p5 = scmp.lt.u32.totalorder %s890_s22, %s1322_s3 }
 0x221   : > { %p892_p7 = pnand %p891_p12, %p712_p11 }
 0x223   : > { %p893_p10 = pneg %p892_p7 }
 0x225   : > { %p898_p6 = pnand %p896_p5, %p893_p10 }
 0x227   : > { %901 = shalt.err (!%p898_p6)
}
 0x228   : > { %691 = dma.vmem_to_hbm [thread:$0]  (%p712_p11), %s496_s24, 128, %s1322_s3, [#allocation5]  }
 0x229   : > { %s902_s9 = scalar_lea.vmem %s1250_s12, 128  ;;  %p909_p4 = scmp.lt.s32.totalorder %s1250_s12, %s1250_s12 }
 0x22a   : > { %p903_p9 = scmp.ne.s32.totalorder %s1250_s12, %s902_s9  ;;  %p910_p1 = scmp.lt.s32.totalorder %s902_s9, %s902_s9 }
 0x22c   : > { %p904_p13 = pnand %p903_p9, %p712_p11  ;;  %p911_p0 = por %p910_p1, %p909_p4 }
 0x22e   : > { %p905_p3 = pneg %p904_p13 }
 0x230   : > { %p912_p8 = pnand %p911_p0, %p905_p3 }
 0x232   : > { %915 = shalt.err (!%p912_p8)
}
 0x233   : > { %s916_s30 = scalar_lea.hbm %s1323_s4, 128 }
 0x234   : > { %p917_p2 = scmp.ne.s32.totalorder %s1323_s4, %s916_s30  ;;  %p922_p10 = scmp.lt.u32.totalorder %s916_s30, %s1323_s4 }
 0x236   : > { %p918_p12 = pnand %p917_p2, %p712_p11 }
 0x238   : > { %p919_p7 = pneg %p918_p12 }
 0x23a   : > { %p924_p5 = pnand %p922_p10, %p919_p7 }
 0x23c   : > { %927 = shalt.err (!%p924_p5)
}
 0x23d   : > { %693 = dma.vmem_to_hbm [thread:$0]  (%p712_p11), %s1250_s12, 128, %s1323_s4, [#allocation11]  }
 0x23e   : > { %965 = dma.done.wait (%p712_p11), [#allocation5], 128  }
 0x23f   : > { %967 = vsyncadd (%p712_p11), [#allocation5], 4294967168 }
 0x240   : > { %969 = dma.done.wait (%p712_p11), [#allocation11], 128  }
 0x241   : > { %971 = vsyncadd (%p712_p11), [#allocation11], 4294967168 }
 0x242 PF: > { %s23_s20 = sadd.s32 1, %s994_s20   ;;  %s1340_s15 = smov %s978_s16 }
 0x243   : > { %p20_p6 = scmp.ge.s32.totalorder %s23_s20, 6   ;;  %s1341_s16 = smov %s982_s17 }
 0x244   : > { %s1342_s17 = smov %s1134_s26  ;;  %s1343_s18 = smov %s990_s19 }
 0x245   : > { %s1344_s19 = smov %s1346_s28  ;;  %22 = sbr.rel (!%p20_p6) target bundleno = 8 (0x8), region = 105 }
 0x24c   :  { %525 = vsyncpa [#allocation4], 1 }
 0x24d   :  { %527 = vsyncpa [#allocation4 + $0x1], 1 }
 0x24e   :  { %528 = vsyncpa [#allocation7], 1 }
 0x24f   :  { %530 = vsyncpa [#allocation7 + $0x1], 1 }
 0x250   :  { %531 = vsyncpa [#allocation5], 1 }
 0x251   :  { %533 = vsyncpa [#allocation5 + $0x1], 1 }
 0x252   :  { %534 = vsyncpa [#allocation11], 1 }

</bundles_post_ra>
